<compile_context>
chip_gen: v5e
topology: v5e:2x2
jax: 0.10.0
libtpu: 0.0.40
codegen_flags: <defaults>
</compile_context>

<pallas_src>
import numpy as np

import jax
import jax.numpy as jnp
from jax.experimental import pallas as pl
from jax.experimental.pallas import tpu as pltpu


def pe_kernel(table_ref, trot_ref, o_ref):
    """One row-tile of the PE table via the angle-addition identity.

    table_ref : (2, T, D) resident table; [0] = sin(q*w + phi), [1] = cos(q*w + phi)
                for q in [0, T)  (i.e. PE rows [0, T) and their cosine companions).
    trot_ref  : (1, 2, D) per-tile rotation strip; [0,0] = cos(i*T*w), [0,1] = sin(i*T*w).
    o_ref     : (T, D) output block for rows [i*T, (i+1)*T)  (final block is clipped).
    """
    pv = table_ref[0]            # (T, D)  sin(q*w + phi)
    pc = table_ref[1]            # (T, D)  cos(q*w + phi)
    rot = trot_ref[...]          # (1, 2, D)
    ct = rot[:, 0, :]            # (1, D)  cos(i*T*w)
    st = rot[:, 1, :]            # (1, D)  sin(i*T*w)
    # sin(a + b) = sin(a)cos(b) + cos(a)sin(b): 2 muls + 1 add per output element.
    o_ref[...] = pv * ct + pc * st


def _round_up(x: int, m: int) -> int:
    return ((x + m - 1) // m) * m


# Conservative per-step footprint budget (resident table ~2 blocks, double-buffered
# output ~2 blocks, slack ~2 blocks), kept well under the 32 MiB scoped-VMEM limit we
# request below (which itself fits every generation: v5e/v6e 128 MiB, v7x 64 MiB phys).
_VMEM_BUDGET_BYTES = 24 * 1024 * 1024
_VMEM_LIMIT_BYTES = 32 * 1024 * 1024


def _pick_tile(L: int, D: int, max_tile: int = 1024) -> int:
    # >= 2 grid steps whenever L allows it (so "parallel" shards across v7x's 2 TCs),
    # rows a multiple of 8, capped by the VMEM budget.
    tile_l = max(8, min(max_tile, _round_up(pl.cdiv(L, 2), 8)))
    while tile_l > 8 and 6 * tile_l * D * 4 > _VMEM_BUDGET_BYTES:
        tile_l = max(8, ((tile_l // 2) // 8) * 8)
    return tile_l


def positional_encoding(d_model: int, max_sequence_length: int) -> jax.Array:
    """Returns PE of shape (max_sequence_length, d_model), float32."""
    assert d_model % 2 == 0, "d_model must be even (sin/cos pair interleave)"
    L, D = max_sequence_length, d_model

    T = _pick_tile(L, D)
    num_tiles = pl.cdiv(L, T)

    # ---- host-side tables (float64 -> float32), computed once per (d_model, L, T) ----
    even_i = np.arange(0, D, 2, dtype=np.float64)
    inv_denom = 1.0 / np.power(10000.0, even_i / D)           # (D/2,)
    omega = np.repeat(inv_denom, 2)                           # (D,) per-lane frequency
    phase = np.zeros((D,), dtype=np.float64)
    phase[1::2] = np.pi / 2.0                                 # cos(x) == sin(x + pi/2)

    q = np.arange(T, dtype=np.float64)[:, None]
    theta = q * omega[None, :] + phase[None, :]               # (T, D)
    table = np.stack([np.sin(theta), np.cos(theta)]).astype(np.float32)       # (2, T, D)

    ti = np.arange(num_tiles, dtype=np.float64)[:, None]
    alpha = (ti * float(T)) * omega[None, :]                  # (num_tiles, D)
    tile_rot = np.stack(
        [np.cos(alpha), np.sin(alpha)], axis=1
    ).astype(np.float32)                                      # (num_tiles, 2, D)

    out = pl.pallas_call(
        pe_kernel,
        out_shape=jax.ShapeDtypeStruct((L, D), jnp.float32),
        grid=(num_tiles,),
        in_specs=[
            # Constant block index -> stays resident in VMEM, DMA'd once.
            pl.BlockSpec((2, T, D), lambda i: (0, 0, 0)),
            # Tiny (1, 2, D) strip per grid step.
            pl.BlockSpec((1, 2, D), lambda i: (i, 0, 0)),
        ],
        out_specs=pl.BlockSpec((T, D), lambda i: (i, 0)),
        compiler_params=pltpu.CompilerParams(
            dimension_semantics=("parallel",),        # shard rows over v7x's 2 TCs
            vmem_limit_bytes=_VMEM_LIMIT_BYTES,
        ),
    )(jnp.asarray(table), jnp.asarray(tile_rot))
    return out


def positional_encoding_ref(d_model: int, max_sequence_length: int) -> jax.Array:
    """Pure-JAX reference mirroring the PyTorch forward exactly."""
    even_i = jnp.arange(0, d_model, 2, dtype=jnp.float32)
    denominator = jnp.power(jnp.float32(10000.0), even_i / d_model)
    position = jnp.arange(max_sequence_length, dtype=jnp.float32).reshape(
        max_sequence_length, 1
    )
    even_pe = jnp.sin(position / denominator)
    odd_pe = jnp.cos(position / denominator)
    stacked = jnp.stack([even_pe, odd_pe], axis=2)
    return stacked.reshape(max_sequence_length, d_model)


if __name__ == "__main__":
    # Module forward takes no tensor inputs; key kept for determinism protocol.
    _ = jax.random.PRNGKey(0)

    # Shapes from the original module's globals.
    d_model = 512
    max_sequence_length = 200

    pe = positional_encoding(d_model, max_sequence_length)
    pe = jax.block_until_ready(pe)

    ref = positional_encoding_ref(d_model, max_sequence_length)
    assert pe.shape == (max_sequence_length, d_model)
    assert pe.dtype == jnp.float32
    # Tolerance covers the f32 formulation differences (float64-accurate tables plus a
    # single f32 angle-addition vs. the reference's direct f32 divide + sin/cos); the
    # observed error stays far below 1e-4 at these shapes.
    max_err = float(jnp.max(jnp.abs(pe - ref)))
    assert jnp.allclose(pe, ref, atol=1e-4, rtol=1e-5), max_err

    print("KERNEL_OK")
</pallas_src>

<mosaic_0001>
module attributes {stable_mosaic.version = 11 : i64} {
  func.func @pe_kernel(%arg0: i32, %arg1: memref<2x104x512xf32, #tpu.memory_space<vmem>>, %arg2: memref<1x2x512xf32, #tpu.memory_space<vmem>>, %arg3: memref<104x512xf32, #tpu.memory_space<vmem>>) attributes {dimension_semantics = [#tpu.dimension_semantics<parallel>], iteration_bounds = array<i64: 2>, scalar_prefetch = 0 : i64, scratch_operands = 0 : i64, tpu.core_type = #tpu.core_type<tc>, window_params = [{pipeline_mode = #tpu.pipeline_mode<synchronous>, transform_indices = @transform_0, window_bounds = array<i64: 2, 104, 512>}, {transform_indices = @transform_1, window_bounds = array<i64: 1, 2, 512>}, {transform_indices = @transform_2, window_bounds = array<i64: 104, 512>}]} {
    %c0 = arith.constant 0 : index
    %c0_0 = arith.constant 0 : index
    %c0_1 = arith.constant 0 : index
    %0 = vector.load %arg1[%c0, %c0_0, %c0_1] : memref<2x104x512xf32, #tpu.memory_space<vmem>>, vector<1x104x512xf32>
    %1 = vector.shape_cast %0 : vector<1x104x512xf32> to vector<104x512xf32>
    %c1 = arith.constant 1 : index
    %c0_2 = arith.constant 0 : index
    %c0_3 = arith.constant 0 : index
    %2 = vector.load %arg1[%c1, %c0_2, %c0_3] : memref<2x104x512xf32, #tpu.memory_space<vmem>>, vector<1x104x512xf32>
    %3 = vector.shape_cast %2 : vector<1x104x512xf32> to vector<104x512xf32>
    %c0_4 = arith.constant 0 : index
    %c0_5 = arith.constant 0 : index
    %c0_6 = arith.constant 0 : index
    %4 = vector.load %arg2[%c0_4, %c0_5, %c0_6] : memref<1x2x512xf32, #tpu.memory_space<vmem>>, vector<1x2x512xf32>
    %5 = vector.extract_strided_slice %4 {offsets = [0, 0, 0], sizes = [1, 1, 512], strides = [1, 1, 1]} : vector<1x2x512xf32> to vector<1x1x512xf32>
    %6 = vector.shape_cast %5 : vector<1x1x512xf32> to vector<1x512xf32>
    %7 = vector.extract_strided_slice %4 {offsets = [0, 1, 0], sizes = [1, 1, 512], strides = [1, 1, 1]} : vector<1x2x512xf32> to vector<1x1x512xf32>
    %8 = vector.shape_cast %7 : vector<1x1x512xf32> to vector<1x512xf32>
    %9 = vector.broadcast %6 : vector<1x512xf32> to vector<104x512xf32>
    %10 = arith.mulf %1, %9 : vector<104x512xf32>
    %11 = vector.broadcast %8 : vector<1x512xf32> to vector<104x512xf32>
    %12 = arith.mulf %3, %11 : vector<104x512xf32>
    %13 = arith.addf %10, %12 : vector<104x512xf32>
    %c0_7 = arith.constant 0 : index
    %c0_8 = arith.constant 0 : index
    %14 = vector.load %arg3[%c0_7, %c0_8] : memref<104x512xf32, #tpu.memory_space<vmem>>, vector<104x512xf32>
    tpu.vector_store %arg3[%c0_7, %c0_8], %13 {strides = array<i32>} : memref<104x512xf32, #tpu.memory_space<vmem>>, vector<104x512xf32>,
    return
  }
  func.func @transform_0(%arg0: i32) -> (i32, i32, i32) {
    %c0_i32 = arith.constant 0 : i32
    %c0_i32_0 = arith.constant 0 : i32
    %c0_i32_1 = arith.constant 0 : i32
    %c0_i32_2 = arith.constant 0 : i32
    return %c0_i32, %c0_i32_0, %c0_i32_1 : i32, i32, i32
  }
  func.func @transform_1(%arg0: i32) -> (i32, i32, i32) {
    %c0_i32 = arith.constant 0 : i32
    %c0_i32_0 = arith.constant 0 : i32
    %c0_i32_1 = arith.constant 0 : i32
    return %arg0, %c0_i32, %c0_i32_0 : i32, i32, i32
  }
  func.func @transform_2(%arg0: i32) -> (i32, i32) {
    %c0_i32 = arith.constant 0 : i32
    %c0_i32_0 = arith.constant 0 : i32
    return %arg0, %c0_i32 : i32, i32
  }
}

</mosaic_0001>

<bundles_post_ra>
// kernel: tpu_custom_call.1
= control target key start
LH: loop header
LB: loop body
LE: loop exit
PB: predicated region body
PF: predicated region fallthrough
CT: control target
= control target key end

     0   :  { %7 = vsyncpa [#allocation3], 0  ;;  %s1226_s0 = inlined_call_operand.hbm [shape: f32[2,104,512], index: 0, kind: input, shape index: {}]   ;;  %s1227_s1 = inlined_call_operand.hbm [shape: f32[2,2,512], index: 1, kind: input, shape index: {}]   ;;  %s1228_s2 = inlined_call_operand.hbm [shape: f32[200,512], index: 2, kind: output, shape index: {}]  }
   0x1   :  { %8 = vsyncpa [#allocation6], 0 }
   0x2   :  { %10 = vsyncpa [#allocation6 + $0x1], 0 }
   0x3   :  { %11 = vsyncpa [#allocation4], 0 }
   0x4   :  { %13 = vsyncpa [#allocation4 + $0x1], 0  ;;  %s883_s9 = smov 0   ;;  %s885_s10 = smov 0  }
   0x5   :  { %s887_s11 = smov 0   ;;  %s889_s12 = smov 0  }
   0x6 LB: > { %s108_s15 = sshll.u32 %s1226_s0, 4  ;;  %s907_s16 = sadd.s32 4294967295, %s860_s12   ;;  %s860_s12 = sphi %s889_s12, %s1239_s12   ;;  %s856_s11 = sphi %s887_s11, %s1238_s11   ;;  %s852_s10 = sphi %s885_s10, %s1237_s10   ;;  %s848_s9 = sphi %s883_s9, %s1236_s9   ;;  %s109_s15 = int_to_ptr.hbm [resolvable:$true] %s108_s15 }
   0x7   : > { %p635_p0 = scmp.ge.s32.totalorder %s860_s12, 1  ;;  %p61_p1 = scmp.eq.s32.totalorder %s907_s16, 0 }
   0x8   : > { %p97_p2 = scmp.lt.s32.totalorder %s860_s12, 3  ;;  %s862_s18 = smov [#allocation2]  }
   0x9   : > { %s110_s19 = sshll.u32 %s862_s18, 4  ;;  %s863_s20 = smov 512   ;;  %s111_s19 = int_to_ptr.vmem [resolvable:$true] %s110_s19 }
   0xa   : > { %p912_p3 = pnand %p635_p0, %p97_p2  ;;  %s864_s21 = smov 32  }
   0xb   : > { %s634_s22 = sadd.s32 4294967294, %s860_s12   ;;  %s923_s23 = sadd.s32 1, %s860_s12  }
   0xc   : > { %p666_p4 = pneg %p912_p3  ;;  %s47_s24 = sadd.s32 1, %s856_s11 }
   0xd   : > { %s44_s25 = ssub.s32 %s860_s12, %s923_s23  ;;  %p54_p7 = scmp.ne.s32.totalorder %s856_s11, %s852_s10 }
   0xe   : > { %p667_p6 = pnand %p666_p4, %p61_p1  ;;  %p45_p8 = scmp.eq.s32.totalorder %s44_s25, 0 }
   0xf   : > { %p55_p9 = scmp.eq.s32.totalorder %s860_s12, 0  ;;  %p60_p10 = scmp.ne.s32.totalorder %s852_s10, %s848_s9 }
  0x10   : > { %669 = dma.hbm_to_vmem [thread:$0]  (!%p667_p6), %s109_s15, 13312, %s111_s19, [#allocation3], %s863_s20, %s863_s20, %s864_s21  }
  0x11   : > { %p84_p11 = scmp.eq.s32.totalorder %s907_s16, 1  ;;  %p939_p12 = por %p61_p1, %p60_p10 }
  0x12   : > { %s935_s26 = scalar_select %p45_p8, %s856_s11, %s47_s24  }
  0x13   : > { %p943_p13 = por %p84_p11, %p54_p7  ;;  %p90_p0 = scmp.eq.s32.totalorder %s634_s22, 1 }
  0x14   : > { %p56_p2 = por %p55_p9, %p54_p7  ;;  %s124_s29 = sand.u32 1, %s856_s11  }
  0x15   : > { %p948_p4 = por %p90_p0, %p60_p10  ;;  %p679_p6 = scmp.lt.s32.totalorder %s860_s12, 2 }
  0x16   : > { %s638_s3 = sshll.u32 %s124_s29, 3  ;;  %s653_s4 = sshll.u32 %s860_s12, 3 }
  0x17   : > { %s133_s7 = scalar_lea.hbm %s1227_s1, %s653_s4  ;;  %s128_s13 = scalar_lea.vmem [#allocation5], %s638_s3 }
  0x18   : > { %s135_s8 = sshll.u32 %s133_s7, 4  ;;  %s137_s14 = sshll.u32 %s128_s13, 4  ;;  %s136_s8 = int_to_ptr.hbm [resolvable:$true] %s135_s8  ;;  %s138_s14 = int_to_ptr.vmem [resolvable:$true] %s137_s14 }
  0x19   : > { %p957_p8 = pnand %p679_p6, %p56_p2  ;;  %s125_s18 = scalar_lea.sflag [#allocation6], %s124_s29 }
  0x1a   : > { %s749_s19 = sshra.s32 %s136_s8, 4  ;;  %s756_s24 = scalar_lea.hbm %s1227_s1, 16  ;;  %s750_s19 = int_to_ptr.hbm [resolvable:$true] %s749_s19 }
  0x1b   : > { %s751_s20 = scalar_lea.hbm %s750_s19, 8  ;;  %p753_p9 = pneg %p957_p8 }
  0x1c   : > { %p752_p7 = scmp.ne.s32.totalorder %s750_s19, %s751_s20  ;;  %p757_p0 = scmp.lt.s32.totalorder %s750_s19, %s1227_s1 }
  0x1d   : > { %p758_p2 = scmp.lt.s32.totalorder %s756_s24, %s751_s20 }
  0x1e   : > { %p754_p10 = pnand %p753_p9, %p752_p7 }
  0x1f   : > { %p759_p6 = por %p758_p2, %p757_p0 }
  0x20   : > { %p755_p11 = pneg %p754_p10 }
  0x22   : > { %p760_p5 = pnand %p759_p6, %p755_p11 }
  0x24   : > { %763 = shalt.err (!%p760_p5)
}
  0x25   : > { %673 = dma.hbm_to_vmem [thread:$0]  (!%p957_p8), %s136_s8, 128, %s138_s14, %s125_s18  }
  0x26   : > { %146 = sbr.rel (%p912_p3) target bundleno = 140 (0x8c), region = 28 }
  0x2b   : > { %835 = dma.done.wait (%p61_p1), [#allocation3], 13312  }
  0x2c   : > { %837 = vsyncadd (%p61_p1), [#allocation3], 4294953984  ;;  %s978_s29 = sand.u32 1, %s852_s10  }
  0x2d   : > { %s643_s4 = sshll.u32 %s978_s29, 3  ;;  %s154_s5 = scalar_lea.sflag [#allocation6], %s978_s29 }
  0x2e   : > { %s157_s6 = scalar_lea.vmem [#allocation5], %s643_s4 }
  0x2f   : > { %839 = dma.done.wait (%p939_p12), %s154_s5, 128  }
  0x30   : > { %841 = vsyncadd (%p939_p12), %s154_s5, 4294967168  ;;  %s658_s17 = smul.u32 416, %s978_s29  ;;  %v290_v0 = vld [vmem:[%s157_s6] sm:$0xff]  ;;  %v187_v9 = vld [vmem:[#allocation2 + $0x10] sm:$0xff]  ;;  %s525_s7 = scalar_lea.sflag [#allocation4], %s978_s29 }
  0x31   : > { %v185_v1 = vld [vmem:[#allocation2] sm:$0xff]  ;;  %v292_v3 = vperm.slane %v290_v0, 0  ;;  %v356_v4 = vperm.slane %v290_v0, 1  ;;  %v293_v5 = vperm.slane %v290_v0, 2  ;;  %v357_v6 = vperm.slane %v290_v0, 3  ;;  %v186_v7 = vld [vmem:[#allocation2 + $0x8] sm:$0xff] }
  0x32   : > { %v238_v2 = vld [vmem:[#allocation2 + $0x1a0] sm:$0xff]  ;;  %v239_v8 = vld [vmem:[#allocation2 + $0x1a8] sm:$0xff]  ;;  %v294_v10 = vperm.slane %v290_v0, 4  ;;  %v358_v11 = vperm.slane %v290_v0, 5  ;;  %v295_v12 = vperm.slane %v290_v0, 6  ;;  %v240_v17 = vld [vmem:[#allocation2 + $0x1b0] sm:$0xff] }
  0x33   : > { %v987_v13 = vperm.slane %v292_v3, 0  ;;  %v989_v14 = vperm.slane %v356_v4, 1  ;;  %v991_v15 = vperm.slane %v293_v5, 0  ;;  %v993_v16 = vperm.slane %v357_v6, 1  ;;  %v188_v18 = vld [vmem:[#allocation2 + $0x18] sm:$0xff]  ;;  %v189_v23 = vld [vmem:[#allocation2 + $0x20] sm:$0xff] }
  0x34   : > { %v995_v19 = vperm.slane %v294_v10, 0  ;;  %v997_v20 = vperm.slane %v358_v11, 1  ;;  %v999_v21 = vperm.slane %v295_v12, 0  ;;  %v359_v22 = vperm.slane %v290_v0, 7  ;;  %v242_v24 = vld [vmem:[#allocation2 + $0x1c0] sm:$0xff]  ;;  %v241_v29 = vld [vmem:[#allocation2 + $0x1b8] sm:$0xff] }
  0x35   : > { %v304_v25 = vmul.f32 %v987_v13, %v185_v1  ;;  %v368_v26 = vmul.f32 %v989_v14, %v238_v2  ;;  %v305_v27 = vmul.f32 %v991_v15, %v186_v7  ;;  %v369_v28 = vmul.f32 %v993_v16, %v239_v8  ;;  %v190_v30 = vld [vmem:[#allocation2 + $0x28] sm:$0xff]  ;;  %v191_v36 = vld [vmem:[#allocation2 + $0x30] sm:$0xff]  ;;  %v192_v38 = vld [vmem:[#allocation2 + $0x38] sm:$0xff]  ;;  %s1017_s27 = scalar_lea.vmem [#allocation7], %s658_s17  ;;  %s532_s8 = smul.u32 (%p943_p13), 13, %s907_s16 }
  0x36   : > { %v243_v31 = vld [vmem:[#allocation2 + $0x1c8] sm:$0xff]  ;;  %v306_v32 = vmul.f32 %v995_v19, %v187_v9  ;;  %v370_v33 = vmul.f32 %v997_v20, %v240_v17  ;;  %v307_v34 = vmul.f32 %v999_v21, %v188_v18  ;;  %v1008_v35 = vperm.slane %v359_v22, 1  ;;  %v244_v37 = vld [vmem:[#allocation2 + $0x1d0] sm:$0xff]  ;;  %v245_v43 = vld [vmem:[#allocation2 + $0x1d8] sm:$0xff] }
  0x37   : > { %v420_v39 = vadd.f32 %v368_v26, %v304_v25  ;;  %v421_v40 = vadd.f32 %v369_v28, %v305_v27  ;;  %v308_v41 = vmul.f32 %v987_v13, %v189_v23  ;;  %v372_v42 = vmul.f32 %v989_v14, %v242_v24  ;;  %v193_v44 = vld [vmem:[#allocation2 + $0x40] sm:$0xff]  ;;  %v194_v50 = vld [vmem:[#allocation2 + $0x48] sm:$0xff]  ;;  %v195_v56 = vld [vmem:[#allocation2 + $0x50] sm:$0xff]  ;;  %s533_s13 = ssub.s32 (%p943_p13), 25, %s532_s8 }
  0x38   : > { %v422_v45 = vadd.f32 %v370_v33, %v306_v32  ;;  %v371_v46 = vmul.f32 %v1008_v35, %v241_v29  ;;  %v309_v47 = vmul.f32 %v991_v15, %v190_v30  ;;  %v373_v48 = vmul.f32 %v993_v16, %v243_v31  ;;  %v246_v49 = vld [vmem:[#allocation2 + $0x1e0] sm:$0xff]  ;;  %v247_v51 = vld [vmem:[#allocation2 + $0x1e8] sm:$0xff]  ;;  %v248_v57 = vld [vmem:[#allocation2 + $0x1f0] sm:$0xff]  ;;  %p534_p1 = scmp.lt.s32.totalorder (%p943_p13), %s533_s13, 13 }
  0x39   : > { %472 = vst [vmem:[%s1017_s27] sm:$0xff] %v420_v39  ;;  %v424_v52 = vadd.f32 %v372_v42, %v308_v41  ;;  %v310_v53 = vmul.f32 %v995_v19, %v191_v36  ;;  %v374_v54 = vmul.f32 %v997_v20, %v244_v37  ;;  %v311_v55 = vmul.f32 %v999_v21, %v192_v38  ;;  %v196_v58 = vld [vmem:[#allocation2 + $0x58] sm:$0xff]  ;;  %v197_v0 = vld [vmem:[#allocation2 + $0x60] sm:$0xff]  ;;  %v198_v6 = vld [vmem:[#allocation2 + $0x68] sm:$0xff] }
  0x3a   : > { %473 = vst [vmem:[%s1017_s27 + $0x8] sm:$0xff] %v421_v40  ;;  %v423_v59 = vadd.f32 %v371_v46, %v307_v34  ;;  %v425_v60 = vadd.f32 %v373_v48, %v309_v47  ;;  %v375_v61 = vmul.f32 %v1008_v35, %v245_v43  ;;  %v312_v62 = vmul.f32 %v987_v13, %v193_v44  ;;  %v249_v63 = vld [vmem:[#allocation2 + $0x1f8] sm:$0xff]  ;;  %v250_v5 = vld [vmem:[#allocation2 + $0x200] sm:$0xff]  ;;  %v251_v7 = vld [vmem:[#allocation2 + $0x208] sm:$0xff] }
  0x3b   : > { %474 = vst [vmem:[%s1017_s27 + $0x10] sm:$0xff] %v422_v45  ;;  %v426_v1 = vadd.f32 %v374_v54, %v310_v53  ;;  %v376_v2 = vmul.f32 %v989_v14, %v246_v49  ;;  %v313_v3 = vmul.f32 %v991_v15, %v194_v50  ;;  %v377_v4 = vmul.f32 %v993_v16, %v247_v51  ;;  %v199_v12 = vld [vmem:[#allocation2 + $0x70] sm:$0xff]  ;;  %v200_v24 = vld [vmem:[#allocation2 + $0x78] sm:$0xff]  ;;  %v201_v30 = vld [vmem:[#allocation2 + $0x80] sm:$0xff] }
  0x3c   : > { %475 = vst [vmem:[%s1017_s27 + $0x18] sm:$0xff] %v423_v59  ;;  %v427_v8 = vadd.f32 %v375_v61, %v311_v55  ;;  %v314_v9 = vmul.f32 %v995_v19, %v195_v56  ;;  %v378_v10 = vmul.f32 %v997_v20, %v248_v57  ;;  %v315_v11 = vmul.f32 %v999_v21, %v196_v58  ;;  %v252_v17 = vld [vmem:[#allocation2 + $0x210] sm:$0xff]  ;;  %v253_v25 = vld [vmem:[#allocation2 + $0x218] sm:$0xff]  ;;  %v254_v31 = vld [vmem:[#allocation2 + $0x220] sm:$0xff] }
  0x3d   : > { %476 = vst [vmem:[%s1017_s27 + $0x20] sm:$0xff] %v424_v52  ;;  %v428_v18 = vadd.f32 %v376_v2, %v312_v62  ;;  %v379_v22 = vmul.f32 %v1008_v35, %v249_v63  ;;  %v316_v23 = vmul.f32 %v987_v13, %v197_v0  ;;  %v429_v26 = vadd.f32 %v377_v4, %v313_v3  ;;  %v202_v36 = vld [vmem:[#allocation2 + $0x88] sm:$0xff]  ;;  %v203_v41 = vld [vmem:[#allocation2 + $0x90] sm:$0xff]  ;;  %v204_v46 = vld [vmem:[#allocation2 + $0x98] sm:$0xff] }
  0x3e   : > { %477 = vst [vmem:[%s1017_s27 + $0x28] sm:$0xff] %v425_v60  ;;  %v380_v27 = vmul.f32 %v989_v14, %v250_v5  ;;  %v317_v28 = vmul.f32 %v991_v15, %v198_v6  ;;  %v381_v29 = vmul.f32 %v993_v16, %v251_v7  ;;  %v430_v32 = vadd.f32 %v378_v10, %v314_v9  ;;  %v255_v37 = vld [vmem:[#allocation2 + $0x228] sm:$0xff]  ;;  %v256_v42 = vld [vmem:[#allocation2 + $0x230] sm:$0xff]  ;;  %v257_v47 = vld [vmem:[#allocation2 + $0x238] sm:$0xff] }
  0x3f   : > { %478 = vst [vmem:[%s1017_s27 + $0x30] sm:$0xff] %v426_v1  ;;  %v318_v33 = vmul.f32 %v995_v19, %v199_v12  ;;  %v382_v34 = vmul.f32 %v997_v20, %v252_v17  ;;  %v431_v38 = vadd.f32 %v379_v22, %v315_v11  ;;  %v319_v39 = vmul.f32 %v999_v21, %v200_v24  ;;  %v205_v51 = vld [vmem:[#allocation2 + $0xa0] sm:$0xff]  ;;  %v206_v56 = vld [vmem:[#allocation2 + $0xa8] sm:$0xff]  ;;  %v207_v61 = vld [vmem:[#allocation2 + $0xb0] sm:$0xff] }
  0x40   : > { %479 = vst [vmem:[%s1017_s27 + $0x38] sm:$0xff] %v427_v8  ;;  %v383_v40 = vmul.f32 %v1008_v35, %v253_v25  ;;  %v432_v43 = vadd.f32 %v380_v27, %v316_v23  ;;  %v320_v44 = vmul.f32 %v987_v13, %v201_v30  ;;  %v384_v45 = vmul.f32 %v989_v14, %v254_v31  ;;  %v258_v52 = vld [vmem:[#allocation2 + $0x240] sm:$0xff]  ;;  %v259_v57 = vld [vmem:[#allocation2 + $0x248] sm:$0xff]  ;;  %v260_v62 = vld [vmem:[#allocation2 + $0x250] sm:$0xff] }
  0x41   : > { %480 = vst [vmem:[%s1017_s27 + $0x40] sm:$0xff] %v428_v18  ;;  %v433_v48 = vadd.f32 %v381_v29, %v317_v28  ;;  %v321_v49 = vmul.f32 %v991_v15, %v202_v36  ;;  %v385_v50 = vmul.f32 %v993_v16, %v255_v37  ;;  %v434_v53 = vadd.f32 %v382_v34, %v318_v33  ;;  %v208_v2 = vld [vmem:[#allocation2 + $0xb8] sm:$0xff]  ;;  %v209_v7 = vld [vmem:[#allocation2 + $0xc0] sm:$0xff]  ;;  %v210_v12 = vld [vmem:[#allocation2 + $0xc8] sm:$0xff] }
  0x42   : > { %481 = vst [vmem:[%s1017_s27 + $0x48] sm:$0xff] %v429_v26  ;;  %v322_v54 = vmul.f32 %v995_v19, %v203_v41  ;;  %v386_v55 = vmul.f32 %v997_v20, %v256_v42  ;;  %v435_v58 = vadd.f32 %v383_v40, %v319_v39  ;;  %v323_v59 = vmul.f32 %v999_v21, %v204_v46  ;;  %v261_v3 = vld [vmem:[#allocation2 + $0x258] sm:$0xff]  ;;  %v262_v8 = vld [vmem:[#allocation2 + $0x260] sm:$0xff]  ;;  %v263_v17 = vld [vmem:[#allocation2 + $0x268] sm:$0xff] }
  0x43   : > { %482 = vst [vmem:[%s1017_s27 + $0x50] sm:$0xff] %v430_v32  ;;  %v387_v60 = vmul.f32 %v1008_v35, %v257_v47  ;;  %v436_v63 = vadd.f32 %v384_v45, %v320_v44  ;;  %v324_v0 = vmul.f32 %v987_v13, %v205_v51  ;;  %v388_v1 = vmul.f32 %v989_v14, %v258_v52  ;;  %v211_v24 = vld [vmem:[#allocation2 + $0xd0] sm:$0xff]  ;;  %v212_v29 = vld [vmem:[#allocation2 + $0xd8] sm:$0xff]  ;;  %v213_v34 = vld [vmem:[#allocation2 + $0xe0] sm:$0xff] }
  0x44   : > { %483 = vst [vmem:[%s1017_s27 + $0x58] sm:$0xff] %v431_v38  ;;  %v437_v4 = vadd.f32 %v385_v50, %v321_v49  ;;  %v325_v5 = vmul.f32 %v991_v15, %v206_v56  ;;  %v389_v6 = vmul.f32 %v993_v16, %v259_v57  ;;  %v438_v9 = vadd.f32 %v386_v55, %v322_v54  ;;  %v264_v25 = vld [vmem:[#allocation2 + $0x270] sm:$0xff]  ;;  %v265_v30 = vld [vmem:[#allocation2 + $0x278] sm:$0xff]  ;;  %v266_v36 = vld [vmem:[#allocation2 + $0x280] sm:$0xff] }
  0x45   : > { %484 = vst [vmem:[%s1017_s27 + $0x60] sm:$0xff] %v432_v43  ;;  %v326_v10 = vmul.f32 %v995_v19, %v207_v61  ;;  %v390_v11 = vmul.f32 %v997_v20, %v260_v62  ;;  %v439_v18 = vadd.f32 %v387_v60, %v323_v59  ;;  %v327_v22 = vmul.f32 %v999_v21, %v208_v2  ;;  %v214_v40 = vld [vmem:[#allocation2 + $0xe8] sm:$0xff]  ;;  %v215_v45 = vld [vmem:[#allocation2 + $0xf0] sm:$0xff]  ;;  %v216_v50 = vld [vmem:[#allocation2 + $0xf8] sm:$0xff] }
  0x46   : > { %485 = vst [vmem:[%s1017_s27 + $0x68] sm:$0xff] %v433_v48  ;;  %v391_v23 = vmul.f32 %v1008_v35, %v261_v3  ;;  %v440_v26 = vadd.f32 %v388_v1, %v324_v0  ;;  %v328_v27 = vmul.f32 %v987_v13, %v209_v7  ;;  %v392_v28 = vmul.f32 %v989_v14, %v262_v8  ;;  %v267_v41 = vld [vmem:[#allocation2 + $0x288] sm:$0xff]  ;;  %v268_v46 = vld [vmem:[#allocation2 + $0x290] sm:$0xff]  ;;  %v269_v51 = vld [vmem:[#allocation2 + $0x298] sm:$0xff] }
  0x47   : > { %486 = vst [vmem:[%s1017_s27 + $0x70] sm:$0xff] %v434_v53  ;;  %v441_v31 = vadd.f32 %v389_v6, %v325_v5  ;;  %v329_v32 = vmul.f32 %v991_v15, %v210_v12  ;;  %v393_v33 = vmul.f32 %v993_v16, %v263_v17  ;;  %v442_v37 = vadd.f32 %v390_v11, %v326_v10  ;;  %v217_v55 = vld [vmem:[#allocation2 + $0x100] sm:$0xff]  ;;  %v218_v60 = vld [vmem:[#allocation2 + $0x108] sm:$0xff]  ;;  %v219_v1 = vld [vmem:[#allocation2 + $0x110] sm:$0xff] }
  0x48   : > { %487 = vst [vmem:[%s1017_s27 + $0x78] sm:$0xff] %v435_v58  ;;  %v330_v38 = vmul.f32 %v995_v19, %v211_v24  ;;  %v394_v39 = vmul.f32 %v997_v20, %v264_v25  ;;  %v443_v42 = vadd.f32 %v391_v23, %v327_v22  ;;  %v331_v43 = vmul.f32 %v999_v21, %v212_v29  ;;  %v270_v56 = vld [vmem:[#allocation2 + $0x2a0] sm:$0xff]  ;;  %v271_v61 = vld [vmem:[#allocation2 + $0x2a8] sm:$0xff]  ;;  %v272_v2 = vld [vmem:[#allocation2 + $0x2b0] sm:$0xff] }
  0x49   : > { %488 = vst [vmem:[%s1017_s27 + $0x80] sm:$0xff] %v436_v63  ;;  %v395_v44 = vmul.f32 %v1008_v35, %v265_v30  ;;  %v444_v47 = vadd.f32 %v392_v28, %v328_v27  ;;  %v332_v48 = vmul.f32 %v987_v13, %v213_v34  ;;  %v396_v49 = vmul.f32 %v989_v14, %v266_v36  ;;  %v220_v6 = vld [vmem:[#allocation2 + $0x118] sm:$0xff]  ;;  %v221_v11 = vld [vmem:[#allocation2 + $0x120] sm:$0xff]  ;;  %v222_v23 = vld [vmem:[#allocation2 + $0x128] sm:$0xff] }
  0x4a   : > { %489 = vst [vmem:[%s1017_s27 + $0x88] sm:$0xff] %v437_v4  ;;  %v445_v52 = vadd.f32 %v393_v33, %v329_v32  ;;  %v333_v53 = vmul.f32 %v991_v15, %v214_v40  ;;  %v397_v54 = vmul.f32 %v993_v16, %v267_v41  ;;  %v446_v57 = vadd.f32 %v394_v39, %v330_v38  ;;  %v273_v7 = vld [vmem:[#allocation2 + $0x2b8] sm:$0xff]  ;;  %v274_v12 = vld [vmem:[#allocation2 + $0x2c0] sm:$0xff]  ;;  %v275_v24 = vld [vmem:[#allocation2 + $0x2c8] sm:$0xff] }
  0x4b   : > { %490 = vst [vmem:[%s1017_s27 + $0x90] sm:$0xff] %v438_v9  ;;  %v334_v58 = vmul.f32 %v995_v19, %v215_v45  ;;  %v398_v59 = vmul.f32 %v997_v20, %v268_v46  ;;  %v447_v62 = vadd.f32 %v395_v44, %v331_v43  ;;  %v335_v63 = vmul.f32 %v999_v21, %v216_v50  ;;  %v223_v28 = vld [vmem:[#allocation2 + $0x130] sm:$0xff]  ;;  %v224_v33 = vld [vmem:[#allocation2 + $0x138] sm:$0xff]  ;;  %v225_v39 = vld [vmem:[#allocation2 + $0x140] sm:$0xff] }
  0x4c   : > { %491 = vst [vmem:[%s1017_s27 + $0x98] sm:$0xff] %v439_v18  ;;  %v399_v0 = vmul.f32 %v1008_v35, %v269_v51  ;;  %v448_v3 = vadd.f32 %v396_v49, %v332_v48  ;;  %v336_v4 = vmul.f32 %v987_v13, %v217_v55  ;;  %v400_v5 = vmul.f32 %v989_v14, %v270_v56  ;;  %v276_v29 = vld [vmem:[#allocation2 + $0x2d0] sm:$0xff]  ;;  %v277_v34 = vld [vmem:[#allocation2 + $0x2d8] sm:$0xff]  ;;  %v278_v40 = vld [vmem:[#allocation2 + $0x2e0] sm:$0xff] }
  0x4d   : > { %492 = vst [vmem:[%s1017_s27 + $0xa0] sm:$0xff] %v440_v26  ;;  %v449_v8 = vadd.f32 %v397_v54, %v333_v53  ;;  %v337_v9 = vmul.f32 %v991_v15, %v218_v60  ;;  %v401_v10 = vmul.f32 %v993_v16, %v271_v61  ;;  %v450_v17 = vadd.f32 %v398_v59, %v334_v58  ;;  %v226_v44 = vld [vmem:[#allocation2 + $0x148] sm:$0xff]  ;;  %v227_v49 = vld [vmem:[#allocation2 + $0x150] sm:$0xff]  ;;  %v228_v54 = vld [vmem:[#allocation2 + $0x158] sm:$0xff] }
  0x4e   : > { %493 = vst [vmem:[%s1017_s27 + $0xa8] sm:$0xff] %v441_v31  ;;  %v338_v18 = vmul.f32 %v995_v19, %v219_v1  ;;  %v402_v22 = vmul.f32 %v997_v20, %v272_v2  ;;  %v451_v25 = vadd.f32 %v399_v0, %v335_v63  ;;  %v339_v26 = vmul.f32 %v999_v21, %v220_v6  ;;  %v279_v45 = vld [vmem:[#allocation2 + $0x2e8] sm:$0xff]  ;;  %v280_v50 = vld [vmem:[#allocation2 + $0x2f0] sm:$0xff]  ;;  %v281_v55 = vld [vmem:[#allocation2 + $0x2f8] sm:$0xff] }
  0x4f   : > { %494 = vst [vmem:[%s1017_s27 + $0xb0] sm:$0xff] %v442_v37  ;;  %v403_v27 = vmul.f32 %v1008_v35, %v273_v7  ;;  %v452_v30 = vadd.f32 %v400_v5, %v336_v4  ;;  %v340_v31 = vmul.f32 %v987_v13, %v221_v11  ;;  %v404_v32 = vmul.f32 %v989_v14, %v274_v12  ;;  %v229_v59 = vld [vmem:[#allocation2 + $0x160] sm:$0xff]  ;;  %v230_v0 = vld [vmem:[#allocation2 + $0x168] sm:$0xff]  ;;  %v231_v5 = vld [vmem:[#allocation2 + $0x170] sm:$0xff] }
  0x50   : > { %495 = vst [vmem:[%s1017_s27 + $0xb8] sm:$0xff] %v443_v42  ;;  %v453_v36 = vadd.f32 %v401_v10, %v337_v9  ;;  %v341_v37 = vmul.f32 %v991_v15, %v222_v23  ;;  %v405_v38 = vmul.f32 %v993_v16, %v275_v24  ;;  %v454_v41 = vadd.f32 %v402_v22, %v338_v18  ;;  %v282_v60 = vld [vmem:[#allocation2 + $0x300] sm:$0xff]  ;;  %v283_v1 = vld [vmem:[#allocation2 + $0x308] sm:$0xff]  ;;  %v284_v6 = vld [vmem:[#allocation2 + $0x310] sm:$0xff] }
  0x51   : > { %496 = vst [vmem:[%s1017_s27 + $0xc0] sm:$0xff] %v444_v47  ;;  %v342_v42 = vmul.f32 %v995_v19, %v223_v28  ;;  %v406_v43 = vmul.f32 %v997_v20, %v276_v29  ;;  %v455_v46 = vadd.f32 %v403_v27, %v339_v26  ;;  %v343_v47 = vmul.f32 %v999_v21, %v224_v33  ;;  %v232_v10 = vld [vmem:[#allocation2 + $0x178] sm:$0xff]  ;;  %v233_v22 = vld [vmem:[#allocation2 + $0x180] sm:$0xff]  ;;  %v234_v27 = vld [vmem:[#allocation2 + $0x188] sm:$0xff] }
  0x52   : > { %497 = vst [vmem:[%s1017_s27 + $0xc8] sm:$0xff] %v445_v52  ;;  %v407_v48 = vmul.f32 %v1008_v35, %v277_v34  ;;  %v456_v51 = vadd.f32 %v404_v32, %v340_v31  ;;  %v344_v52 = vmul.f32 %v987_v13, %v225_v39  ;;  %v408_v53 = vmul.f32 %v989_v14, %v278_v40  ;;  %v285_v11 = vld [vmem:[#allocation2 + $0x318] sm:$0xff]  ;;  %v286_v23 = vld [vmem:[#allocation2 + $0x320] sm:$0xff]  ;;  %v287_v28 = vld [vmem:[#allocation2 + $0x328] sm:$0xff] }
  0x53   : > { %498 = vst [vmem:[%s1017_s27 + $0xd0] sm:$0xff] %v446_v57  ;;  %v457_v56 = vadd.f32 %v405_v38, %v341_v37  ;;  %v345_v57 = vmul.f32 %v991_v15, %v226_v44  ;;  %v409_v58 = vmul.f32 %v993_v16, %v279_v45  ;;  %v458_v61 = vadd.f32 %v406_v43, %v342_v42  ;;  %v235_v32 = vld [vmem:[#allocation2 + $0x190] sm:$0xff]  ;;  %v236_v38 = vld [vmem:[#allocation2 + $0x198] sm:$0xff] }
  0x54   : > { %499 = vst [vmem:[%s1017_s27 + $0xd8] sm:$0xff] %v447_v62  ;;  %v346_v62 = vmul.f32 %v995_v19, %v227_v49  ;;  %v410_v63 = vmul.f32 %v997_v20, %v280_v50  ;;  %v459_v2 = vadd.f32 %v407_v48, %v343_v47  ;;  %v411_v4 = vmul.f32 %v1008_v35, %v281_v55  ;;  %v288_v33 = vld [vmem:[#allocation2 + $0x330] sm:$0xff]  ;;  %v289_v39 = vld [vmem:[#allocation2 + $0x338] sm:$0xff] }
  0x55   : > { %500 = vst [vmem:[%s1017_s27 + $0xe0] sm:$0xff] %v448_v3  ;;  %v347_v3 = vmul.f32 %v999_v21, %v228_v54  ;;  %v460_v7 = vadd.f32 %v408_v53, %v344_v52  ;;  %v412_v9 = vmul.f32 %v989_v14, %v282_v60  ;;  %v461_v12 = vadd.f32 %v409_v58, %v345_v57 }
  0x56   : > { %501 = vst [vmem:[%s1017_s27 + $0xe8] sm:$0xff] %v449_v8  ;;  %v348_v8 = vmul.f32 %v987_v13, %v229_v59  ;;  %v413_v18 = vmul.f32 %v993_v16, %v283_v1  ;;  %v462_v24 = vadd.f32 %v410_v63, %v346_v62  ;;  %v414_v26 = vmul.f32 %v997_v20, %v284_v6 }
  0x57   : > { %502 = vst [vmem:[%s1017_s27 + $0xf0] sm:$0xff] %v450_v17  ;;  %v349_v17 = vmul.f32 %v991_v15, %v230_v0  ;;  %v463_v29 = vadd.f32 %v411_v4, %v347_v3  ;;  %v415_v31 = vmul.f32 %v1008_v35, %v285_v11  ;;  %v416_v37 = vmul.f32 %v989_v14, %v286_v23 }
  0x58   : > { %503 = vst [vmem:[%s1017_s27 + $0xf8] sm:$0xff] %v451_v25  ;;  %v350_v25 = vmul.f32 %v995_v19, %v231_v5  ;;  %v464_v34 = vadd.f32 %v412_v9, %v348_v8  ;;  %v417_v42 = vmul.f32 %v993_v16, %v287_v28  ;;  %v418_v14 = vmul.f32 %v997_v20, %v288_v33 }
  0x59   : > { %504 = vst [vmem:[%s1017_s27 + $0x100] sm:$0xff] %v452_v30  ;;  %v351_v30 = vmul.f32 %v999_v21, %v232_v10  ;;  %v465_v40 = vadd.f32 %v413_v18, %v349_v17  ;;  %v355_v45 = vmul.f32 %v999_v21, %v236_v38 }
  0x5a   : > { %505 = vst [vmem:[%s1017_s27 + $0x108] sm:$0xff] %v453_v36  ;;  %v352_v36 = vmul.f32 %v987_v13, %v233_v22  ;;  %v466_v43 = vadd.f32 %v414_v26, %v350_v25  ;;  %v354_v13 = vmul.f32 %v995_v19, %v235_v32 }
  0x5b   : > { %506 = vst [vmem:[%s1017_s27 + $0x110] sm:$0xff] %v454_v41  ;;  %v353_v41 = vmul.f32 %v991_v15, %v234_v27  ;;  %v467_v44 = vadd.f32 %v415_v31, %v351_v30  ;;  %v419_v15 = vmul.f32 %v1008_v35, %v289_v39 }
  0x5c   : > { %507 = vst [vmem:[%s1017_s27 + $0x118] sm:$0xff] %v455_v46  ;;  %v468_v46 = vadd.f32 %v416_v37, %v352_v36  ;;  %v470_v47 = vadd.f32 %v418_v14, %v354_v13 }
  0x5d   : > { %508 = vst [vmem:[%s1017_s27 + $0x120] sm:$0xff] %v456_v51  ;;  %v469_v16 = vadd.f32 %v417_v42, %v353_v41  ;;  %v471_v48 = vadd.f32 %v419_v15, %v355_v45 }
  0x5e   : > { %509 = vst [vmem:[%s1017_s27 + $0x128] sm:$0xff] %v457_v56 }
  0x5f   : > { %510 = vst [vmem:[%s1017_s27 + $0x130] sm:$0xff] %v458_v61 }
  0x60   : > { %511 = vst [vmem:[%s1017_s27 + $0x138] sm:$0xff] %v459_v2 }
  0x61   : > { %512 = vst [vmem:[%s1017_s27 + $0x140] sm:$0xff] %v460_v7 }
  0x62   : > { %513 = vst [vmem:[%s1017_s27 + $0x148] sm:$0xff] %v461_v12 }
  0x63   : > { %514 = vst [vmem:[%s1017_s27 + $0x150] sm:$0xff] %v462_v24 }
  0x64   : > { %515 = vst [vmem:[%s1017_s27 + $0x158] sm:$0xff] %v463_v29 }
  0x65   : > { %516 = vst [vmem:[%s1017_s27 + $0x160] sm:$0xff] %v464_v34 }
  0x66   : > { %517 = vst [vmem:[%s1017_s27 + $0x168] sm:$0xff] %v465_v40 }
  0x67   : > { %518 = vst [vmem:[%s1017_s27 + $0x170] sm:$0xff] %v466_v43 }
  0x68   : > { %519 = vst [vmem:[%s1017_s27 + $0x178] sm:$0xff] %v467_v44  ;;  %531 = sbr.rel (!%p943_p13) target bundleno = 140 (0x8c), region = 40 }
  0x69   : > { %520 = vst [vmem:[%s1017_s27 + $0x180] sm:$0xff] %v468_v46 }
  0x6a   : > { %521 = vst [vmem:[%s1017_s27 + $0x188] sm:$0xff] %v469_v16 }
  0x6b   : > { %522 = vst [vmem:[%s1017_s27 + $0x190] sm:$0xff] %v470_v47 }
  0x6c   : > { %523 = vst [vmem:[%s1017_s27 + $0x198] sm:$0xff] %v471_v48 }
  0x6d   : > { %s1241_s13 = smov (!%p534_p1, %s533_s13), 13 }
  0x6e   : > { %s654_s14 = sshll.u32 %s1241_s13, 5 }
  0x6f   : > { %s538_s15 = ssub.s32 416, %s654_s14 }
  0x70   : > { %s539_s18 = sshll.u32 %s538_s15, 4 }
  0x71   : > { %540 = vsyncadd %s525_s7, %s539_s18  ;;  %p1172_p3 = scmp.ne.s32.totalorder %s654_s14, 0  ;;  %s657_s19 = smul.u32 416, %s907_s16 }
  0x72   : > { %s546_s20 = sshll.u32 %s1017_s27, 4  ;;  %s650_s21 = sshll.u32 %s1241_s13, 9  ;;  %s1182_s20 = int_to_ptr.vmem [resolvable:$true] %s546_s20 }
  0x73   : > { %s544_s25 = scalar_lea.hbm %s1228_s2, %s657_s19  ;;  %s779_s4 = sshra.s32 %s1182_s20, 4  ;;  %s780_s4 = int_to_ptr.vmem [resolvable:$true] %s779_s4 }
  0x74   : > { %s548_s3 = sshll.u32 %s544_s25, 4  ;;  %s781_s5 = sshrl.u32 %s650_s21, 4  ;;  %s1184_s3 = int_to_ptr.hbm [resolvable:$true] %s548_s3 }
  0x75   : > { %s786_s6 = scalar_lea.vmem %s780_s4, %s781_s5  ;;  %s865_s16 = smov [#allocation7]  }
  0x76   : > { %p787_p5 = scmp.ne.s32.totalorder %s780_s4, %s786_s6  ;;  %s790_s17 = scalar_lea.vmem %s865_s16, 832 }
  0x77   : > { %p792_p8 = scmp.lt.s32.totalorder %s790_s17, %s786_s6 }
  0x78   : > { %p788_p12 = pnand %p787_p5, %p1172_p3 }
  0x7a   : > { %p789_p13 = pneg %p788_p12 }
  0x7c   : > { %p794_p7 = pnand %p792_p8, %p789_p13 }
  0x7e   : > { %797 = shalt.err (!%p794_p7)
}
  0x7f   : > { %s798_s27 = sshra.s32 %s1184_s3, 4  ;;  %s809_s18 = scalar_lea.hbm %s1228_s2, 800  ;;  %s799_s27 = int_to_ptr.hbm [resolvable:$true] %s798_s27 }
  0x80   : > { %s805_s8 = scalar_lea.hbm %s799_s27, %s781_s5  ;;  %p810_p0 = scmp.lt.s32.totalorder %s799_s27, %s1228_s2 }
  0x81   : > { %p806_p9 = scmp.ne.s32.totalorder %s799_s27, %s805_s8  ;;  %p811_p2 = scmp.lt.s32.totalorder %s809_s18, %s805_s8 }
  0x83   : > { %p807_p10 = pnand %p806_p9, %p1172_p3  ;;  %p812_p6 = por %p811_p2, %p810_p0 }
  0x85   : > { %p808_p11 = pneg %p807_p10 }
  0x87   : > { %p813_p1 = pnand %p812_p6, %p808_p11 }
  0x89   : > { %816 = shalt.err (!%p813_p1)
}
  0x8a   : > { %s866_s24 = smov 512   ;;  %s867_s25 = smov 32  }
  0x8b   : > { %554 = dma.vmem_to_hbm [thread:$0]  (%p1172_p3), %s1182_s20, %s650_s21, %s1184_s3, %s525_s7, %s866_s24, %s866_s24, %s867_s25  }
  0x8c PF: > { %s563_s4 = sand.u32 1, %s848_s9   ;;  %p1235_p5 = scmp.ge.s32.totalorder %s860_s12, 2 }
  0x8d   : > { %s564_s5 = scalar_lea.sflag [#allocation4], %s563_s4 }
  0x8e   : > { %p675_p12 = pnand %p1235_p5, %p948_p4 }
  0x90   : > { %p676_p13 = pneg %p675_p12 }
  0x92   : > { %843 = dma.done.wait (%p676_p13), %s564_s5, 6656  }
  0x93   : > { %845 = vsyncadd (%p676_p13), %s564_s5, 4294960640  ;;  %p16_p8 = scmp.ge.s32.totalorder %s923_s23, 4   ;;  %s1236_s9 = smov %s852_s10 }
  0x94   : > { %s1237_s10 = smov %s856_s11  ;;  %s1238_s11 = smov %s935_s26 }
  0x95   : > { %s1239_s12 = smov %s923_s23  ;;  %18 = sbr.rel (!%p16_p8) target bundleno = 6 (0x6), region = 79 }
  0x9a   :  { %570 = vsyncpa [#allocation3], 1 }
  0x9b   :  { %572 = vsyncpa [#allocation3 + $0x1], 1 }
  0x9c   :  { %573 = vsyncpa [#allocation6], 1 }
  0x9d   :  { %575 = vsyncpa [#allocation6 + $0x1], 1 }
  0x9e   :  { %576 = vsyncpa [#allocation4], 1 }
  0x9f   :  { %578 = vsyncpa [#allocation4 + $0x1], 1 }

</bundles_post_ra>
